<compile_context>
chip_gen: v5e
topology: v5e:2x2
jax: 0.10.0
libtpu: 0.0.40
codegen_flags: <defaults>
</compile_context>

<pallas_src>
import functools

import jax
import jax.numpy as jnp
from jax import lax
from jax.experimental import pallas as pl
from jax.experimental.pallas import tpu as pltpu

B_INIT_VALUE = 0.1
LOG_SIG_MAX = 2.0
LOG_SIG_MIN = -20.0
W_INIT_VALUE = 0.003


def _round_up(x, m):
    return (x + m - 1) // m * m


# -----------------------------------------------------------------------------
# Kernel
# -----------------------------------------------------------------------------
def _policy_kernel(x_ref,            # (T, Bt, D)   bf16 time-major input block
                   wih_ref,          # (D, 4H)      bf16 fused W_ih^T  [i|f|g|o]
                   bg_ref,           # (1, 4H)      f32  fused (b_ih + b_hh)
                   whh_ref,          # (4H, 4H)     bf16 fused W_hh^T in rows [3H,4H)
                   w1_ref, b1_ref,   # (4H, H) bf16 (rows [3H,4H) = W1^T), (1, H) f32
                   w2_ref, b2_ref,   # (H, H) bf16 pre-T, (1, H) f32
                   wh_ref, bh_ref,   # (H, P) bf16, (1, P) f32  heads [mean|log_std|0]
                   out_ref,          # (Bt, P)      f32 [mean | std | 0]
                   *, num_actions):
    T, B, D = x_ref.shape
    H4 = whh_ref.shape[0]
    H = H4 // 4

    # ---- Hoisted, gate-fused input projection: one big bf16 matmul ----------
    x_flat = x_ref[...].reshape(T * B, D)                      # leading-dim merge
    xg = (jnp.dot(x_flat, wih_ref[...], preferred_element_type=jnp.float32)
          + bg_ref[...]).reshape(T, B, H4)                     # (T, B, 4H) f32

    # Lane-block layout inside every (B, 4H) tile: [ i | f | g | o ].
    lane = lax.broadcasted_iota(jnp.int32, (B, H4), 1)
    is_g = (lane >= 2 * H) & (lane < 3 * H)
    scale = jnp.where(is_g, 1.0, 0.5)                          # hoisted out of loop

    whh = whh_ref[...]
    h4 = jnp.zeros((B, H4), jnp.float32)                       # h lives in block 3
    c4 = jnp.zeros((B, H4), jnp.float32)                       # c lives in block 1

    # ---- Recurrence: statically unrolled over T (T small & static here) -----
    # TODO(synk): for large T, move T onto an 'arbitrary' grid axis and carry
    #             (h4, c4) in VMEM scratch instead of full unroll + hoisted xg.
    # TODO(synk): keep whh resident in MXU weight regs across steps via
    #             pltpu.matmul_push_rhs / matmul_acc_lhs / matmul_pop.
    # TODO(synk): when H % 128 == 0, use lane-aligned gate slices instead of the
    #             zero-padded (4H, 4H) W_hh / roll scheme (padding wastes K).
    for t in range(T):
        gates = xg[t] + jnp.dot(h4.astype(jnp.bfloat16), whh,
                                preferred_element_type=jnp.float32)     # (B, 4H)
        # One whole-tile tanh on the EUP: sigmoid(x) = 0.5*(1 + tanh(x/2)) for
        # i/f/o lanes, tanh(x) for g lanes -- no narrow slices, no extra exp.
        th = jnp.tanh(gates * scale)
        act = jnp.where(is_g, th, 0.5 * (th + 1.0))             # [ i | f | g | o ]
        # Align gate blocks with XLU rolls (free slot) for the c/h update.
        prod = act * pltpu.roll(act, shift=2 * H, axis=1)       # blk0 = i*g
        c4 = pltpu.roll(prod, shift=H, axis=1) + act * c4       # blk1 = i*g + f*c
        h4 = act * pltpu.roll(jnp.tanh(c4), shift=2 * H, axis=1)  # blk3 = o*tanh(c')

    # ---- MLP head: h is consumed straight from lane block 3 via padded W1 ---
    h1 = jnp.maximum(
        jnp.dot(h4.astype(jnp.bfloat16), w1_ref[...],
                preferred_element_type=jnp.float32) + b1_ref[...], 0.0)
    h2 = jnp.maximum(
        jnp.dot(h1.astype(jnp.bfloat16), w2_ref[...],
                preferred_element_type=jnp.float32) + b2_ref[...], 0.0)

    # Single lane-dense head matmul: cols [0,A)=mean, [A,2A)=log_std, rest 0.
    raw = jnp.dot(h2.astype(jnp.bfloat16), wh_ref[...],
                  preferred_element_type=jnp.float32) + bh_ref[...]

    # std = clamp(exp(log_std), LOG_SIG_MIN, LOG_SIG_MAX)  (matches the module).
    olane = lax.broadcasted_iota(jnp.int32, raw.shape, 1)
    is_std = (olane >= num_actions) & (olane < 2 * num_actions)
    std_all = jnp.clip(jnp.exp(raw), LOG_SIG_MIN, LOG_SIG_MAX)
    out_ref[...] = jnp.where(is_std, std_all, raw).astype(out_ref.dtype)


# -----------------------------------------------------------------------------
# Parameter handling
# -----------------------------------------------------------------------------
def init_params(key, num_inputs, num_actions, hidden_size):
    """PyTorch-layout parameters mirroring PolicyModel's init."""
    ks = jax.random.split(key, 10)
    H, D, A = hidden_size, num_inputs, num_actions

    # LSTM params (PyTorch default init: U(-1/sqrt(H), 1/sqrt(H)))
    s = 1.0 / jnp.sqrt(H)
    w_ih = jax.random.uniform(ks[0], (4 * H, D), jnp.float32, -s, s)
    w_hh = jax.random.uniform(ks[1], (4 * H, H), jnp.float32, -s, s)
    b_ih = jax.random.uniform(ks[2], (1, 4 * H), jnp.float32, -s, s)
    b_hh = jax.random.uniform(ks[3], (1, 4 * H), jnp.float32, -s, s)

    # linear1 / linear2: fanin_init weights, bias filled with B_INIT_VALUE
    f1 = 1.0 / jnp.sqrt(H)
    w1 = jax.random.uniform(ks[4], (H, H), jnp.float32, -f1, f1)
    b1 = jnp.full((1, H), B_INIT_VALUE, jnp.float32)
    w2 = jax.random.uniform(ks[5], (H, H), jnp.float32, -f1, f1)
    b2 = jnp.full((1, H), B_INIT_VALUE, jnp.float32)

    # mean / log_std heads: U(-W_INIT_VALUE, W_INIT_VALUE), independent keys.
    wm = jax.random.uniform(ks[6], (A, H), jnp.float32, -W_INIT_VALUE, W_INIT_VALUE)
    bm = jax.random.uniform(ks[7], (1, A), jnp.float32, -W_INIT_VALUE, W_INIT_VALUE)
    ws = jax.random.uniform(ks[8], (A, H), jnp.float32, -W_INIT_VALUE, W_INIT_VALUE)
    bs = jax.random.uniform(ks[9], (1, A), jnp.float32, -W_INIT_VALUE, W_INIT_VALUE)

    return dict(w_ih=w_ih, w_hh=w_hh, b_ih=b_ih, b_hh=b_hh,
                w1=w1, b1=b1, w2=w2, b2=b2, wm=wm, bm=bm, ws=ws, bs=bs)


def prepare_kernel_params(params, num_actions):
    """One-time layout plumbing: fuse / transpose / pad / bf16-cast weights."""
    H = params["w_hh"].shape[1]
    A = num_actions

    # Gate-fused, pre-transposed input projection (PyTorch gate order i,f,g,o).
    wih = params["w_ih"].T.astype(jnp.bfloat16)                      # (D, 4H)
    bg = (params["b_ih"] + params["b_hh"]).astype(jnp.float32)       # (1, 4H)

    # Gate-fused W_hh^T placed in rows [3H, 4H) (h lives in lane block 3);
    # zero rows elsewhere make the garbage lane blocks of h4 contribute nothing.
    whh_pad = jnp.zeros((4 * H, 4 * H), jnp.float32)
    whh_pad = whh_pad.at[3 * H:, :].set(params["w_hh"].T).astype(jnp.bfloat16)

    # W1^T in rows [3H, 4H) so the kernel never slices h out of its lane block.
    w1_pad = jnp.zeros((4 * H, H), jnp.float32)
    w1_pad = w1_pad.at[3 * H:, :].set(params["w1"].T).astype(jnp.bfloat16)

    w2_t = params["w2"].T.astype(jnp.bfloat16)                       # (H, H)

    # Fused head weights, zero-padded to a lane-dense multiple of 128.
    out_pad = _round_up(2 * A, 128)
    wh = jnp.zeros((H, out_pad), jnp.float32)
    wh = wh.at[:, :A].set(params["wm"].T).at[:, A:2 * A].set(params["ws"].T)
    bh = jnp.zeros((1, out_pad), jnp.float32)
    bh = bh.at[:, :A].set(params["bm"]).at[:, A:2 * A].set(params["bs"])

    return dict(wih=wih, bg=bg, whh=whh_pad,
                w1=w1_pad, b1=params["b1"].astype(jnp.float32),
                w2=w2_t, b2=params["b2"].astype(jnp.float32),
                wh=wh.astype(jnp.bfloat16), bh=bh)


# -----------------------------------------------------------------------------
# pallas_call wrapper
# -----------------------------------------------------------------------------
@functools.partial(jax.jit, static_argnames=("num_actions", "b_tile"))
def _policy_forward_padded(x_tm, kp, num_actions, b_tile):
    """x_tm: (T, B_pad, D) bf16 time-major, B_pad % b_tile == 0, b_tile % 8 == 0."""
    T, B_pad, D = x_tm.shape
    H = kp["whh"].shape[0] // 4
    out_pad = kp["wh"].shape[1]
    n_b = B_pad // b_tile

    kernel = functools.partial(_policy_kernel, num_actions=num_actions)

    def w_spec(arr):
        # TODO(synk): single-buffer constant weight blocks (pl.Buffered(1)) to
        #             reclaim VMEM headroom on v7x's 64 MiB.
        return pl.BlockSpec(arr.shape, lambda b, nd=arr.ndim: (0,) * nd)

    # Rough per-grid-step VMEM estimate (bytes); only raise the scoped limit
    # (v5e 16 MiB / v6e-v7x 32 MiB defaults) when the estimate needs it.
    est = (2 * T * b_tile * D * 2                      # double-buffered bf16 x block
           + 4 * T * b_tile * H * 4                    # hoisted xg (f32, in-kernel)
           + 2 * b_tile * out_pad * 4                  # output block
           + 2 * sum(int(v.size) * v.dtype.itemsize for v in kp.values()))
    cp_kwargs = dict(dimension_semantics=("parallel",))   # batch axis -> both TCs (v7x)
    if est > 12 * 1024 * 1024:
        # TODO(synk): for very large T/H chunk T over an 'arbitrary' grid axis
        #             instead of relying solely on a bigger VMEM limit.
        cp_kwargs["vmem_limit_bytes"] = int(min(est * 5 // 4 + (4 << 20), 48 << 20))

    out = pl.pallas_call(
        kernel,
        out_shape=jax.ShapeDtypeStruct((B_pad, out_pad), jnp.float32),
        grid=(n_b,),
        in_specs=[
            pl.BlockSpec((T, b_tile, D), lambda b: (0, b, 0)),   # x
            w_spec(kp["wih"]), w_spec(kp["bg"]), w_spec(kp["whh"]),
            w_spec(kp["w1"]), w_spec(kp["b1"]),
            w_spec(kp["w2"]), w_spec(kp["b2"]),
            w_spec(kp["wh"]), w_spec(kp["bh"]),
        ],
        out_specs=pl.BlockSpec((b_tile, out_pad), lambda b: (b, 0)),
        compiler_params=pltpu.CompilerParams(**cp_kwargs),
    )(x_tm, kp["wih"], kp["bg"], kp["whh"],
      kp["w1"], kp["b1"], kp["w2"], kp["b2"],
      kp["wh"], kp["bh"])
    return out


def policy_forward(state, kparams, num_actions):
    """Matches PolicyModel.forward semantics.

    state: (B, T, num_inputs) or (T, num_inputs) float32 (batch_first).
    kparams: output of prepare_kernel_params.
    Returns (mean, std); squeezes the batch dim when it equals 1.
    """
    if state.ndim == 2:
        state = state[None, ...]                      # state.unsqueeze(0)
    B, T, D = state.shape
    # bf16 input: halves x DMA bytes; matmul accumulation stays f32 in-kernel.
    x_tm = jnp.transpose(state, (1, 0, 2)).astype(jnp.bfloat16)   # (T, B, D)

    # Generation-aware batch tiling: >=2 tiles (when B permits) so the
    # "parallel" axis can shard across both v7x TensorCores; the extra grid
    # step costs ~0.35us on single-TC v5e/v6e.
    B8 = max(8, _round_up(B, 8))
    if B8 <= 8:
        b_tile = B8
        B_pad = B8
    elif B8 <= 1024:
        b_tile = _round_up(pl.cdiv(B8, 2), 16)        # 16-aligned for bf16 sublanes
        B_pad = 2 * b_tile
    else:
        b_tile = 512
        B_pad = _round_up(B8, b_tile)
    if B_pad != B:
        x_tm = jnp.pad(x_tm, ((0, 0), (0, B_pad - B), (0, 0)))

    out = _policy_forward_padded(x_tm, kparams, num_actions, b_tile)  # (B_pad, P)
    mean = out[:B, :num_actions]
    std = out[:B, num_actions:2 * num_actions]
    if mean.shape[0] == 1:
        mean = mean[0]
        std = std[0]
    return mean, std


# -----------------------------------------------------------------------------
# Pure-JAX reference (for a correctness sanity check only)
# -----------------------------------------------------------------------------
def _reference_forward(state, params, num_actions):
    H = params["w_hh"].shape[1]
    x = state.astype(jnp.float32)
    if x.ndim == 2:
        x = x[None, ...]
    B, T, D = x.shape
    P = lax.Precision.HIGHEST
    wih_t = params["w_ih"].T
    whh_t = params["w_hh"].T
    bg = params["b_ih"] + params["b_hh"]
    h = jnp.zeros((B, H), jnp.float32)
    c = jnp.zeros((B, H), jnp.float32)
    for t in range(T):
        gates = (jnp.dot(x[:, t, :], wih_t, precision=P)
                 + jnp.dot(h, whh_t, precision=P) + bg)
        i_g = jax.nn.sigmoid(gates[:, 0 * H:1 * H])
        f_g = jax.nn.sigmoid(gates[:, 1 * H:2 * H])
        g_g = jnp.tanh(gates[:, 2 * H:3 * H])
        o_g = jax.nn.sigmoid(gates[:, 3 * H:4 * H])
        c = f_g * c + i_g * g_g
        h = o_g * jnp.tanh(c)
    h1 = jax.nn.relu(jnp.dot(h, params["w1"].T, precision=P) + params["b1"])
    h2 = jax.nn.relu(jnp.dot(h1, params["w2"].T, precision=P) + params["b2"])
    mean = jnp.dot(h2, params["wm"].T, precision=P) + params["bm"]
    log_std = jnp.dot(h2, params["ws"].T, precision=P) + params["bs"]
    std = jnp.clip(jnp.exp(log_std), LOG_SIG_MIN, LOG_SIG_MAX)
    if mean.shape[0] == 1:
        mean, std = mean[0], std[0]
    return mean, std


if __name__ == "__main__":
    # Small shapes consistent with the module's forward:
    #   batch=2, seq=8, num_inputs=16, hidden=32, num_actions=4
    B, T, NUM_INPUTS, HIDDEN, NUM_ACTIONS = 2, 8, 16, 32, 4

    key = jax.random.PRNGKey(0)
    k_x, k_p = jax.random.split(key)
    state = jax.random.normal(k_x, (B, T, NUM_INPUTS), jnp.float32)

    params = init_params(k_p, NUM_INPUTS, NUM_ACTIONS, HIDDEN)
    kparams = prepare_kernel_params(params, NUM_ACTIONS)   # one-time layout prep

    mean, std = policy_forward(state, kparams, NUM_ACTIONS)
    jax.block_until_ready((mean, std))

    assert mean.shape == (B, NUM_ACTIONS), mean.shape
    assert std.shape == (B, NUM_ACTIONS), std.shape

    # Sanity check against a pure-JAX f32 reference (kernel uses bf16 operands,
    # f32 accumulation / elementwise math).
    mean_ref, std_ref = _reference_forward(state, params, NUM_ACTIONS)
    assert jnp.allclose(mean, mean_ref, rtol=1e-2, atol=2e-3), (mean, mean_ref)
    assert jnp.allclose(std, std_ref, rtol=1e-2, atol=2e-3), (std, std_ref)

    print("KERNEL_OK")
</pallas_src>

<mosaic_0001>
module attributes {stable_mosaic.version = 11 : i64} {
  func.func @_policy_kernel(%arg0: i32, %arg1: memref<8x8x16xbf16, #tpu.memory_space<vmem>>, %arg2: memref<16x128xbf16, #tpu.memory_space<vmem>>, %arg3: memref<1x128xf32, #tpu.memory_space<vmem>>, %arg4: memref<128x128xbf16, #tpu.memory_space<vmem>>, %arg5: memref<128x32xbf16, #tpu.memory_space<vmem>>, %arg6: memref<1x32xf32, #tpu.memory_space<vmem>>, %arg7: memref<32x32xbf16, #tpu.memory_space<vmem>>, %arg8: memref<1x32xf32, #tpu.memory_space<vmem>>, %arg9: memref<32x128xbf16, #tpu.memory_space<vmem>>, %arg10: memref<1x128xf32, #tpu.memory_space<vmem>>, %arg11: memref<8x128xf32, #tpu.memory_space<vmem>>) attributes {dimension_semantics = [#tpu.dimension_semantics<parallel>], iteration_bounds = array<i64: 1>, scalar_prefetch = 0 : i64, scratch_operands = 0 : i64, tpu.core_type = #tpu.core_type<tc>, window_params = [{transform_indices = @transform_0, window_bounds = array<i64: 8, 8, 16>}, {pipeline_mode = #tpu.pipeline_mode<synchronous>, transform_indices = @transform_1, window_bounds = array<i64: 16, 128>}, {pipeline_mode = #tpu.pipeline_mode<synchronous>, transform_indices = @transform_2, window_bounds = array<i64: 1, 128>}, {pipeline_mode = #tpu.pipeline_mode<synchronous>, transform_indices = @transform_3, window_bounds = array<i64: 128, 128>}, {pipeline_mode = #tpu.pipeline_mode<synchronous>, transform_indices = @transform_4, window_bounds = array<i64: 128, 32>}, {pipeline_mode = #tpu.pipeline_mode<synchronous>, transform_indices = @transform_5, window_bounds = array<i64: 1, 32>}, {pipeline_mode = #tpu.pipeline_mode<synchronous>, transform_indices = @transform_6, window_bounds = array<i64: 32, 32>}, {pipeline_mode = #tpu.pipeline_mode<synchronous>, transform_indices = @transform_7, window_bounds = array<i64: 1, 32>}, {pipeline_mode = #tpu.pipeline_mode<synchronous>, transform_indices = @transform_8, window_bounds = array<i64: 32, 128>}, {pipeline_mode = #tpu.pipeline_mode<synchronous>, transform_indices = @transform_9, window_bounds = array<i64: 1, 128>}, {transform_indices = @transform_10, window_bounds = array<i64: 8, 128>}]} {
    %c0 = arith.constant 0 : index
    %c0_0 = arith.constant 0 : index
    %c0_1 = arith.constant 0 : index
    %0 = vector.load %arg1[%c0, %c0_0, %c0_1] : memref<8x8x16xbf16, #tpu.memory_space<vmem>>, vector<8x8x16xbf16>
    %1 = vector.shape_cast %0 : vector<8x8x16xbf16> to vector<64x16xbf16>
    %c0_2 = arith.constant 0 : index
    %c0_3 = arith.constant 0 : index
    %2 = vector.load %arg2[%c0_2, %c0_3] : memref<16x128xbf16, #tpu.memory_space<vmem>>, vector<16x128xbf16>
    %cst = arith.constant dense<0.000000e+00> : vector<64x128xf32>
    %3 = tpu.matmul %1, %2, %cst {dimension_numbers = #tpu.dot_dimension_numbers<[1], [0], [0], [1], [0, 0, 1, 1], [], []>} : vector<64x16xbf16>, vector<16x128xbf16>, vector<64x128xf32> -> vector<64x128xf32>
    %c0_4 = arith.constant 0 : index
    %c0_5 = arith.constant 0 : index
    %4 = vector.load %arg3[%c0_4, %c0_5] : memref<1x128xf32, #tpu.memory_space<vmem>>, vector<1x128xf32>
    %5 = vector.broadcast %4 : vector<1x128xf32> to vector<64x128xf32>
    %6 = arith.addf %3, %5 : vector<64x128xf32>
    %7 = vector.shape_cast %6 : vector<64x128xf32> to vector<8x8x128xf32>
    %8 = tpu.iota {dimensions = array<i32: 1>} : vector<8x128xi32>
    %c64_i32 = arith.constant 64 : i32
    %9 = vector.broadcast %c64_i32 : i32 to vector<8x128xi32>
    %10 = arith.cmpi sge, %8, %9 : vector<8x128xi32>
    %c96_i32 = arith.constant 96 : i32
    %11 = vector.broadcast %c96_i32 : i32 to vector<8x128xi32>
    %12 = arith.cmpi slt, %8, %11 : vector<8x128xi32>
    %13 = arith.andi %10, %12 : vector<8x128xi1>
    %cst_6 = arith.constant 1.000000e+00 : f32
    %cst_7 = arith.constant 5.000000e-01 : f32
    %14 = vector.broadcast %cst_6 : f32 to vector<8x128xf32>
    %15 = vector.broadcast %cst_7 : f32 to vector<8x128xf32>
    %16 = arith.select %13, %14, %15 : vector<8x128xi1>, vector<8x128xf32>
    %c0_8 = arith.constant 0 : index
    %c0_9 = arith.constant 0 : index
    %17 = vector.load %arg4[%c0_8, %c0_9] : memref<128x128xbf16, #tpu.memory_space<vmem>>, vector<128x128xbf16>
    %cst_10 = arith.constant 0.000000e+00 : f32
    %18 = vector.broadcast %cst_10 : f32 to vector<8x128xf32>
    %cst_11 = arith.constant 0.000000e+00 : f32
    %19 = vector.broadcast %cst_11 : f32 to vector<8x128xf32>
    %20 = vector.extract_strided_slice %7 {offsets = [0, 0, 0], sizes = [1, 8, 128], strides = [1, 1, 1]} : vector<8x8x128xf32> to vector<1x8x128xf32>
    %21 = vector.shape_cast %20 : vector<1x8x128xf32> to vector<8x128xf32>
    %22 = arith.truncf %18 : vector<8x128xf32> to vector<8x128xbf16>
    %cst_12 = arith.constant dense<0.000000e+00> : vector<8x128xf32>
    %23 = tpu.matmul %22, %17, %cst_12 {dimension_numbers = #tpu.dot_dimension_numbers<[1], [0], [0], [1], [0, 0, 1, 1], [], []>} : vector<8x128xbf16>, vector<128x128xbf16>, vector<8x128xf32> -> vector<8x128xf32>
    %24 = arith.addf %21, %23 : vector<8x128xf32>
    %25 = arith.mulf %24, %16 : vector<8x128xf32>
    %26 = math.tanh %25 : vector<8x128xf32>
    %cst_13 = arith.constant 1.000000e+00 : f32
    %27 = vector.broadcast %cst_13 : f32 to vector<8x128xf32>
    %28 = arith.addf %26, %27 : vector<8x128xf32>
    %cst_14 = arith.constant 5.000000e-01 : f32
    %29 = vector.broadcast %cst_14 : f32 to vector<8x128xf32>
    %30 = arith.mulf %29, %28 : vector<8x128xf32>
    %31 = arith.select %13, %26, %30 : vector<8x128xi1>, vector<8x128xf32>
    %c64_i32_15 = arith.constant 64 : i32
    %32 = tpu.dynamic_rotate %31 by %c64_i32_15 dim 1 : vector<8x128xf32>, i32 -> vector<8x128xf32>
    %33 = arith.mulf %31, %32 : vector<8x128xf32>
    %c32_i32 = arith.constant 32 : i32
    %34 = tpu.dynamic_rotate %33 by %c32_i32 dim 1 : vector<8x128xf32>, i32 -> vector<8x128xf32>
    %35 = arith.mulf %31, %19 : vector<8x128xf32>
    %36 = arith.addf %34, %35 : vector<8x128xf32>
    %37 = math.tanh %36 : vector<8x128xf32>
    %c64_i32_16 = arith.constant 64 : i32
    %38 = tpu.dynamic_rotate %37 by %c64_i32_16 dim 1 : vector<8x128xf32>, i32 -> vector<8x128xf32>
    %39 = arith.mulf %31, %38 : vector<8x128xf32>
    %40 = vector.extract_strided_slice %7 {offsets = [1, 0, 0], sizes = [1, 8, 128], strides = [1, 1, 1]} : vector<8x8x128xf32> to vector<1x8x128xf32>
    %41 = vector.shape_cast %40 : vector<1x8x128xf32> to vector<8x128xf32>
    %42 = arith.truncf %39 : vector<8x128xf32> to vector<8x128xbf16>
    %cst_17 = arith.constant dense<0.000000e+00> : vector<8x128xf32>
    %43 = tpu.matmul %42, %17, %cst_17 {dimension_numbers = #tpu.dot_dimension_numbers<[1], [0], [0], [1], [0, 0, 1, 1], [], []>} : vector<8x128xbf16>, vector<128x128xbf16>, vector<8x128xf32> -> vector<8x128xf32>
    %44 = arith.addf %41, %43 : vector<8x128xf32>
    %45 = arith.mulf %44, %16 : vector<8x128xf32>
    %46 = math.tanh %45 : vector<8x128xf32>
    %cst_18 = arith.constant 1.000000e+00 : f32
    %47 = vector.broadcast %cst_18 : f32 to vector<8x128xf32>
    %48 = arith.addf %46, %47 : vector<8x128xf32>
    %cst_19 = arith.constant 5.000000e-01 : f32
    %49 = vector.broadcast %cst_19 : f32 to vector<8x128xf32>
    %50 = arith.mulf %49, %48 : vector<8x128xf32>
    %51 = arith.select %13, %46, %50 : vector<8x128xi1>, vector<8x128xf32>
    %c64_i32_20 = arith.constant 64 : i32
    %52 = tpu.dynamic_rotate %51 by %c64_i32_20 dim 1 : vector<8x128xf32>, i32 -> vector<8x128xf32>
    %53 = arith.mulf %51, %52 : vector<8x128xf32>
    %c32_i32_21 = arith.constant 32 : i32
    %54 = tpu.dynamic_rotate %53 by %c32_i32_21 dim 1 : vector<8x128xf32>, i32 -> vector<8x128xf32>
    %55 = arith.mulf %51, %36 : vector<8x128xf32>
    %56 = arith.addf %54, %55 : vector<8x128xf32>
    %57 = math.tanh %56 : vector<8x128xf32>
    %c64_i32_22 = arith.constant 64 : i32
    %58 = tpu.dynamic_rotate %57 by %c64_i32_22 dim 1 : vector<8x128xf32>, i32 -> vector<8x128xf32>
    %59 = arith.mulf %51, %58 : vector<8x128xf32>
    %60 = vector.extract_strided_slice %7 {offsets = [2, 0, 0], sizes = [1, 8, 128], strides = [1, 1, 1]} : vector<8x8x128xf32> to vector<1x8x128xf32>
    %61 = vector.shape_cast %60 : vector<1x8x128xf32> to vector<8x128xf32>
    %62 = arith.truncf %59 : vector<8x128xf32> to vector<8x128xbf16>
    %cst_23 = arith.constant dense<0.000000e+00> : vector<8x128xf32>
    %63 = tpu.matmul %62, %17, %cst_23 {dimension_numbers = #tpu.dot_dimension_numbers<[1], [0], [0], [1], [0, 0, 1, 1], [], []>} : vector<8x128xbf16>, vector<128x128xbf16>, vector<8x128xf32> -> vector<8x128xf32>
    %64 = arith.addf %61, %63 : vector<8x128xf32>
    %65 = arith.mulf %64, %16 : vector<8x128xf32>
    %66 = math.tanh %65 : vector<8x128xf32>
    %cst_24 = arith.constant 1.000000e+00 : f32
    %67 = vector.broadcast %cst_24 : f32 to vector<8x128xf32>
    %68 = arith.addf %66, %67 : vector<8x128xf32>
    %cst_25 = arith.constant 5.000000e-01 : f32
    %69 = vector.broadcast %cst_25 : f32 to vector<8x128xf32>
    %70 = arith.mulf %69, %68 : vector<8x128xf32>
    %71 = arith.select %13, %66, %70 : vector<8x128xi1>, vector<8x128xf32>
    %c64_i32_26 = arith.constant 64 : i32
    %72 = tpu.dynamic_rotate %71 by %c64_i32_26 dim 1 : vector<8x128xf32>, i32 -> vector<8x128xf32>
    %73 = arith.mulf %71, %72 : vector<8x128xf32>
    %c32_i32_27 = arith.constant 32 : i32
    %74 = tpu.dynamic_rotate %73 by %c32_i32_27 dim 1 : vector<8x128xf32>, i32 -> vector<8x128xf32>
    %75 = arith.mulf %71, %56 : vector<8x128xf32>
    %76 = arith.addf %74, %75 : vector<8x128xf32>
    %77 = math.tanh %76 : vector<8x128xf32>
    %c64_i32_28 = arith.constant 64 : i32
    %78 = tpu.dynamic_rotate %77 by %c64_i32_28 dim 1 : vector<8x128xf32>, i32 -> vector<8x128xf32>
    %79 = arith.mulf %71, %78 : vector<8x128xf32>
    %80 = vector.extract_strided_slice %7 {offsets = [3, 0, 0], sizes = [1, 8, 128], strides = [1, 1, 1]} : vector<8x8x128xf32> to vector<1x8x128xf32>
    %81 = vector.shape_cast %80 : vector<1x8x128xf32> to vector<8x128xf32>
    %82 = arith.truncf %79 : vector<8x128xf32> to vector<8x128xbf16>
    %cst_29 = arith.constant dense<0.000000e+00> : vector<8x128xf32>
    %83 = tpu.matmul %82, %17, %cst_29 {dimension_numbers = #tpu.dot_dimension_numbers<[1], [0], [0], [1], [0, 0, 1, 1], [], []>} : vector<8x128xbf16>, vector<128x128xbf16>, vector<8x128xf32> -> vector<8x128xf32>
    %84 = arith.addf %81, %83 : vector<8x128xf32>
    %85 = arith.mulf %84, %16 : vector<8x128xf32>
    %86 = math.tanh %85 : vector<8x128xf32>
    %cst_30 = arith.constant 1.000000e+00 : f32
    %87 = vector.broadcast %cst_30 : f32 to vector<8x128xf32>
    %88 = arith.addf %86, %87 : vector<8x128xf32>
    %cst_31 = arith.constant 5.000000e-01 : f32
    %89 = vector.broadcast %cst_31 : f32 to vector<8x128xf32>
    %90 = arith.mulf %89, %88 : vector<8x128xf32>
    %91 = arith.select %13, %86, %90 : vector<8x128xi1>, vector<8x128xf32>
    %c64_i32_32 = arith.constant 64 : i32
    %92 = tpu.dynamic_rotate %91 by %c64_i32_32 dim 1 : vector<8x128xf32>, i32 -> vector<8x128xf32>
    %93 = arith.mulf %91, %92 : vector<8x128xf32>
    %c32_i32_33 = arith.constant 32 : i32
    %94 = tpu.dynamic_rotate %93 by %c32_i32_33 dim 1 : vector<8x128xf32>, i32 -> vector<8x128xf32>
    %95 = arith.mulf %91, %76 : vector<8x128xf32>
    %96 = arith.addf %94, %95 : vector<8x128xf32>
    %97 = math.tanh %96 : vector<8x128xf32>
    %c64_i32_34 = arith.constant 64 : i32
    %98 = tpu.dynamic_rotate %97 by %c64_i32_34 dim 1 : vector<8x128xf32>, i32 -> vector<8x128xf32>
    %99 = arith.mulf %91, %98 : vector<8x128xf32>
    %100 = vector.extract_strided_slice %7 {offsets = [4, 0, 0], sizes = [1, 8, 128], strides = [1, 1, 1]} : vector<8x8x128xf32> to vector<1x8x128xf32>
    %101 = vector.shape_cast %100 : vector<1x8x128xf32> to vector<8x128xf32>
    %102 = arith.truncf %99 : vector<8x128xf32> to vector<8x128xbf16>
    %cst_35 = arith.constant dense<0.000000e+00> : vector<8x128xf32>
    %103 = tpu.matmul %102, %17, %cst_35 {dimension_numbers = #tpu.dot_dimension_numbers<[1], [0], [0], [1], [0, 0, 1, 1], [], []>} : vector<8x128xbf16>, vector<128x128xbf16>, vector<8x128xf32> -> vector<8x128xf32>
    %104 = arith.addf %101, %103 : vector<8x128xf32>
    %105 = arith.mulf %104, %16 : vector<8x128xf32>
    %106 = math.tanh %105 : vector<8x128xf32>
    %cst_36 = arith.constant 1.000000e+00 : f32
    %107 = vector.broadcast %cst_36 : f32 to vector<8x128xf32>
    %108 = arith.addf %106, %107 : vector<8x128xf32>
    %cst_37 = arith.constant 5.000000e-01 : f32
    %109 = vector.broadcast %cst_37 : f32 to vector<8x128xf32>
    %110 = arith.mulf %109, %108 : vector<8x128xf32>
    %111 = arith.select %13, %106, %110 : vector<8x128xi1>, vector<8x128xf32>
    %c64_i32_38 = arith.constant 64 : i32
    %112 = tpu.dynamic_rotate %111 by %c64_i32_38 dim 1 : vector<8x128xf32>, i32 -> vector<8x128xf32>
    %113 = arith.mulf %111, %112 : vector<8x128xf32>
    %c32_i32_39 = arith.constant 32 : i32
    %114 = tpu.dynamic_rotate %113 by %c32_i32_39 dim 1 : vector<8x128xf32>, i32 -> vector<8x128xf32>
    %115 = arith.mulf %111, %96 : vector<8x128xf32>
    %116 = arith.addf %114, %115 : vector<8x128xf32>
    %117 = math.tanh %116 : vector<8x128xf32>
    %c64_i32_40 = arith.constant 64 : i32
    %118 = tpu.dynamic_rotate %117 by %c64_i32_40 dim 1 : vector<8x128xf32>, i32 -> vector<8x128xf32>
    %119 = arith.mulf %111, %118 : vector<8x128xf32>
    %120 = vector.extract_strided_slice %7 {offsets = [5, 0, 0], sizes = [1, 8, 128], strides = [1, 1, 1]} : vector<8x8x128xf32> to vector<1x8x128xf32>
    %121 = vector.shape_cast %120 : vector<1x8x128xf32> to vector<8x128xf32>
    %122 = arith.truncf %119 : vector<8x128xf32> to vector<8x128xbf16>
    %cst_41 = arith.constant dense<0.000000e+00> : vector<8x128xf32>
    %123 = tpu.matmul %122, %17, %cst_41 {dimension_numbers = #tpu.dot_dimension_numbers<[1], [0], [0], [1], [0, 0, 1, 1], [], []>} : vector<8x128xbf16>, vector<128x128xbf16>, vector<8x128xf32> -> vector<8x128xf32>
    %124 = arith.addf %121, %123 : vector<8x128xf32>
    %125 = arith.mulf %124, %16 : vector<8x128xf32>
    %126 = math.tanh %125 : vector<8x128xf32>
    %cst_42 = arith.constant 1.000000e+00 : f32
    %127 = vector.broadcast %cst_42 : f32 to vector<8x128xf32>
    %128 = arith.addf %126, %127 : vector<8x128xf32>
    %cst_43 = arith.constant 5.000000e-01 : f32
    %129 = vector.broadcast %cst_43 : f32 to vector<8x128xf32>
    %130 = arith.mulf %129, %128 : vector<8x128xf32>
    %131 = arith.select %13, %126, %130 : vector<8x128xi1>, vector<8x128xf32>
    %c64_i32_44 = arith.constant 64 : i32
    %132 = tpu.dynamic_rotate %131 by %c64_i32_44 dim 1 : vector<8x128xf32>, i32 -> vector<8x128xf32>
    %133 = arith.mulf %131, %132 : vector<8x128xf32>
    %c32_i32_45 = arith.constant 32 : i32
    %134 = tpu.dynamic_rotate %133 by %c32_i32_45 dim 1 : vector<8x128xf32>, i32 -> vector<8x128xf32>
    %135 = arith.mulf %131, %116 : vector<8x128xf32>
    %136 = arith.addf %134, %135 : vector<8x128xf32>
    %137 = math.tanh %136 : vector<8x128xf32>
    %c64_i32_46 = arith.constant 64 : i32
    %138 = tpu.dynamic_rotate %137 by %c64_i32_46 dim 1 : vector<8x128xf32>, i32 -> vector<8x128xf32>
    %139 = arith.mulf %131, %138 : vector<8x128xf32>
    %140 = vector.extract_strided_slice %7 {offsets = [6, 0, 0], sizes = [1, 8, 128], strides = [1, 1, 1]} : vector<8x8x128xf32> to vector<1x8x128xf32>
    %141 = vector.shape_cast %140 : vector<1x8x128xf32> to vector<8x128xf32>
    %142 = arith.truncf %139 : vector<8x128xf32> to vector<8x128xbf16>
    %cst_47 = arith.constant dense<0.000000e+00> : vector<8x128xf32>
    %143 = tpu.matmul %142, %17, %cst_47 {dimension_numbers = #tpu.dot_dimension_numbers<[1], [0], [0], [1], [0, 0, 1, 1], [], []>} : vector<8x128xbf16>, vector<128x128xbf16>, vector<8x128xf32> -> vector<8x128xf32>
    %144 = arith.addf %141, %143 : vector<8x128xf32>
    %145 = arith.mulf %144, %16 : vector<8x128xf32>
    %146 = math.tanh %145 : vector<8x128xf32>
    %cst_48 = arith.constant 1.000000e+00 : f32
    %147 = vector.broadcast %cst_48 : f32 to vector<8x128xf32>
    %148 = arith.addf %146, %147 : vector<8x128xf32>
    %cst_49 = arith.constant 5.000000e-01 : f32
    %149 = vector.broadcast %cst_49 : f32 to vector<8x128xf32>
    %150 = arith.mulf %149, %148 : vector<8x128xf32>
    %151 = arith.select %13, %146, %150 : vector<8x128xi1>, vector<8x128xf32>
    %c64_i32_50 = arith.constant 64 : i32
    %152 = tpu.dynamic_rotate %151 by %c64_i32_50 dim 1 : vector<8x128xf32>, i32 -> vector<8x128xf32>
    %153 = arith.mulf %151, %152 : vector<8x128xf32>
    %c32_i32_51 = arith.constant 32 : i32
    %154 = tpu.dynamic_rotate %153 by %c32_i32_51 dim 1 : vector<8x128xf32>, i32 -> vector<8x128xf32>
    %155 = arith.mulf %151, %136 : vector<8x128xf32>
    %156 = arith.addf %154, %155 : vector<8x128xf32>
    %157 = math.tanh %156 : vector<8x128xf32>
    %c64_i32_52 = arith.constant 64 : i32
    %158 = tpu.dynamic_rotate %157 by %c64_i32_52 dim 1 : vector<8x128xf32>, i32 -> vector<8x128xf32>
    %159 = arith.mulf %151, %158 : vector<8x128xf32>
    %160 = vector.extract_strided_slice %7 {offsets = [7, 0, 0], sizes = [1, 8, 128], strides = [1, 1, 1]} : vector<8x8x128xf32> to vector<1x8x128xf32>
    %161 = vector.shape_cast %160 : vector<1x8x128xf32> to vector<8x128xf32>
    %162 = arith.truncf %159 : vector<8x128xf32> to vector<8x128xbf16>
    %cst_53 = arith.constant dense<0.000000e+00> : vector<8x128xf32>
    %163 = tpu.matmul %162, %17, %cst_53 {dimension_numbers = #tpu.dot_dimension_numbers<[1], [0], [0], [1], [0, 0, 1, 1], [], []>} : vector<8x128xbf16>, vector<128x128xbf16>, vector<8x128xf32> -> vector<8x128xf32>
    %164 = arith.addf %161, %163 : vector<8x128xf32>
    %165 = arith.mulf %164, %16 : vector<8x128xf32>
    %166 = math.tanh %165 : vector<8x128xf32>
    %cst_54 = arith.constant 1.000000e+00 : f32
    %167 = vector.broadcast %cst_54 : f32 to vector<8x128xf32>
    %168 = arith.addf %166, %167 : vector<8x128xf32>
    %cst_55 = arith.constant 5.000000e-01 : f32
    %169 = vector.broadcast %cst_55 : f32 to vector<8x128xf32>
    %170 = arith.mulf %169, %168 : vector<8x128xf32>
    %171 = arith.select %13, %166, %170 : vector<8x128xi1>, vector<8x128xf32>
    %c64_i32_56 = arith.constant 64 : i32
    %172 = tpu.dynamic_rotate %171 by %c64_i32_56 dim 1 : vector<8x128xf32>, i32 -> vector<8x128xf32>
    %173 = arith.mulf %171, %172 : vector<8x128xf32>
    %c32_i32_57 = arith.constant 32 : i32
    %174 = tpu.dynamic_rotate %173 by %c32_i32_57 dim 1 : vector<8x128xf32>, i32 -> vector<8x128xf32>
    %175 = arith.mulf %171, %156 : vector<8x128xf32>
    %176 = arith.addf %174, %175 : vector<8x128xf32>
    %177 = math.tanh %176 : vector<8x128xf32>
    %c64_i32_58 = arith.constant 64 : i32
    %178 = tpu.dynamic_rotate %177 by %c64_i32_58 dim 1 : vector<8x128xf32>, i32 -> vector<8x128xf32>
    %179 = arith.mulf %171, %178 : vector<8x128xf32>
    %180 = arith.truncf %179 : vector<8x128xf32> to vector<8x128xbf16>
    %c0_59 = arith.constant 0 : index
    %c0_60 = arith.constant 0 : index
    %181 = vector.load %arg5[%c0_59, %c0_60] : memref<128x32xbf16, #tpu.memory_space<vmem>>, vector<128x32xbf16>
    %cst_61 = arith.constant dense<0.000000e+00> : vector<8x32xf32>
    %182 = tpu.matmul %180, %181, %cst_61 {dimension_numbers = #tpu.dot_dimension_numbers<[1], [0], [0], [1], [0, 0, 1, 1], [], []>} : vector<8x128xbf16>, vector<128x32xbf16>, vector<8x32xf32> -> vector<8x32xf32>
    %c0_62 = arith.constant 0 : index
    %c0_63 = arith.constant 0 : index
    %183 = vector.load %arg6[%c0_62, %c0_63] : memref<1x32xf32, #tpu.memory_space<vmem>>, vector<1x32xf32>
    %184 = vector.broadcast %183 : vector<1x32xf32> to vector<8x32xf32>
    %185 = arith.addf %182, %184 : vector<8x32xf32>
    %cst_64 = arith.constant 0.000000e+00 : f32
    %186 = vector.broadcast %cst_64 : f32 to vector<8x32xf32>
    %187 = arith.maximumf %185, %186 : vector<8x32xf32>
    %188 = arith.truncf %187 : vector<8x32xf32> to vector<8x32xbf16>
    %c0_65 = arith.constant 0 : index
    %c0_66 = arith.constant 0 : index
    %189 = vector.load %arg7[%c0_65, %c0_66] : memref<32x32xbf16, #tpu.memory_space<vmem>>, vector<32x32xbf16>
    %cst_67 = arith.constant dense<0.000000e+00> : vector<8x32xf32>
    %190 = tpu.matmul %188, %189, %cst_67 {dimension_numbers = #tpu.dot_dimension_numbers<[1], [0], [0], [1], [0, 0, 1, 1], [], []>} : vector<8x32xbf16>, vector<32x32xbf16>, vector<8x32xf32> -> vector<8x32xf32>
    %c0_68 = arith.constant 0 : index
    %c0_69 = arith.constant 0 : index
    %191 = vector.load %arg8[%c0_68, %c0_69] : memref<1x32xf32, #tpu.memory_space<vmem>>, vector<1x32xf32>
    %192 = vector.broadcast %191 : vector<1x32xf32> to vector<8x32xf32>
    %193 = arith.addf %190, %192 : vector<8x32xf32>
    %cst_70 = arith.constant 0.000000e+00 : f32
    %194 = vector.broadcast %cst_70 : f32 to vector<8x32xf32>
    %195 = arith.maximumf %193, %194 : vector<8x32xf32>
    %196 = arith.truncf %195 : vector<8x32xf32> to vector<8x32xbf16>
    %c0_71 = arith.constant 0 : index
    %c0_72 = arith.constant 0 : index
    %197 = vector.load %arg9[%c0_71, %c0_72] : memref<32x128xbf16, #tpu.memory_space<vmem>>, vector<32x128xbf16>
    %cst_73 = arith.constant dense<0.000000e+00> : vector<8x128xf32>
    %198 = tpu.matmul %196, %197, %cst_73 {dimension_numbers = #tpu.dot_dimension_numbers<[1], [0], [0], [1], [0, 0, 1, 1], [], []>} : vector<8x32xbf16>, vector<32x128xbf16>, vector<8x128xf32> -> vector<8x128xf32>
    %c0_74 = arith.constant 0 : index
    %c0_75 = arith.constant 0 : index
    %199 = vector.load %arg10[%c0_74, %c0_75] : memref<1x128xf32, #tpu.memory_space<vmem>>, vector<1x128xf32>
    %200 = vector.broadcast %199 : vector<1x128xf32> to vector<8x128xf32>
    %201 = arith.addf %198, %200 : vector<8x128xf32>
    %202 = tpu.iota {dimensions = array<i32: 1>} : vector<8x128xi32>
    %c4_i32 = arith.constant 4 : i32
    %203 = vector.broadcast %c4_i32 : i32 to vector<8x128xi32>
    %204 = arith.cmpi sge, %202, %203 : vector<8x128xi32>
    %c8_i32 = arith.constant 8 : i32
    %205 = vector.broadcast %c8_i32 : i32 to vector<8x128xi32>
    %206 = arith.cmpi slt, %202, %205 : vector<8x128xi32>
    %207 = arith.andi %204, %206 : vector<8x128xi1>
    %208 = math.exp %201 : vector<8x128xf32>
    %cst_76 = arith.constant -2.000000e+01 : f32
    %cst_77 = arith.constant 2.000000e+00 : f32
    %209 = vector.broadcast %cst_76 : f32 to vector<8x128xf32>
    %210 = arith.maximumf %209, %208 : vector<8x128xf32>
    %211 = vector.broadcast %cst_77 : f32 to vector<8x128xf32>
    %212 = arith.minimumf %211, %210 : vector<8x128xf32>
    %213 = arith.select %207, %212, %201 : vector<8x128xi1>, vector<8x128xf32>
    %c0_78 = arith.constant 0 : index
    %c0_79 = arith.constant 0 : index
    %214 = vector.load %arg11[%c0_78, %c0_79] : memref<8x128xf32, #tpu.memory_space<vmem>>, vector<8x128xf32>
    tpu.vector_store %arg11[%c0_78, %c0_79], %213 {strides = array<i32>} : memref<8x128xf32, #tpu.memory_space<vmem>>, vector<8x128xf32>,
    return
  }
  func.func @transform_0(%arg0: i32) -> (i32, i32, i32) {
    %c0_i32 = arith.constant 0 : i32
    %c0_i32_0 = arith.constant 0 : i32
    %c0_i32_1 = arith.constant 0 : i32
    return %c0_i32, %arg0, %c0_i32_0 : i32, i32, i32
  }
  func.func @transform_1(%arg0: i32) -> (i32, i32) {
    %c0_i32 = arith.constant 0 : i32
    %c0_i32_0 = arith.constant 0 : i32
    %c0_i32_1 = arith.constant 0 : i32
    return %c0_i32, %c0_i32_0 : i32, i32
  }
  func.func @transform_2(%arg0: i32) -> (i32, i32) {
    %c0_i32 = arith.constant 0 : i32
    %c0_i32_0 = arith.constant 0 : i32
    %c0_i32_1 = arith.constant 0 : i32
    return %c0_i32, %c0_i32_0 : i32, i32
  }
  func.func @transform_3(%arg0: i32) -> (i32, i32) {
    %c0_i32 = arith.constant 0 : i32
    %c0_i32_0 = arith.constant 0 : i32
    %c0_i32_1 = arith.constant 0 : i32
    return %c0_i32, %c0_i32_0 : i32, i32
  }
  func.func @transform_4(%arg0: i32) -> (i32, i32) {
    %c0_i32 = arith.constant 0 : i32
    %c0_i32_0 = arith.constant 0 : i32
    %c0_i32_1 = arith.constant 0 : i32
    return %c0_i32, %c0_i32_0 : i32, i32
  }
  func.func @transform_5(%arg0: i32) -> (i32, i32) {
    %c0_i32 = arith.constant 0 : i32
    %c0_i32_0 = arith.constant 0 : i32
    %c0_i32_1 = arith.constant 0 : i32
    return %c0_i32, %c0_i32_0 : i32, i32
  }
  func.func @transform_6(%arg0: i32) -> (i32, i32) {
    %c0_i32 = arith.constant 0 : i32
    %c0_i32_0 = arith.constant 0 : i32
    %c0_i32_1 = arith.constant 0 : i32
    return %c0_i32, %c0_i32_0 : i32, i32
  }
  func.func @transform_7(%arg0: i32) -> (i32, i32) {
    %c0_i32 = arith.constant 0 : i32
    %c0_i32_0 = arith.constant 0 : i32
    %c0_i32_1 = arith.constant 0 : i32
    return %c0_i32, %c0_i32_0 : i32, i32
  }
  func.func @transform_8(%arg0: i32) -> (i32, i32) {
    %c0_i32 = arith.constant 0 : i32
    %c0_i32_0 = arith.constant 0 : i32
    %c0_i32_1 = arith.constant 0 : i32
    return %c0_i32, %c0_i32_0 : i32, i32
  }
  func.func @transform_9(%arg0: i32) -> (i32, i32) {
    %c0_i32 = arith.constant 0 : i32
    %c0_i32_0 = arith.constant 0 : i32
    %c0_i32_1 = arith.constant 0 : i32
    return %c0_i32, %c0_i32_0 : i32, i32
  }
  func.func @transform_10(%arg0: i32) -> (i32, i32) {
    %c0_i32 = arith.constant 0 : i32
    %c0_i32_0 = arith.constant 0 : i32
    return %arg0, %c0_i32 : i32, i32
  }
}

</mosaic_0001>

<bundles_post_ra>
// kernel: _policy_forward_padded.1
= control target key start
LH: loop header
LB: loop body
LE: loop exit
PB: predicated region body
PF: predicated region fallthrough
CT: control target
= control target key end

     0   :  { %15 = vsyncpa [#allocation3], 0  ;;  %s1314_s0 = inlined_call_operand.hbm [shape: bf16[8,8,16], index: 0, kind: input, shape index: {}]   ;;  %s1315_s1 = inlined_call_operand.vmem [shape: bf16[16,128], index: 1, kind: input, shape index: {}]   ;;  %s1316_s2 = inlined_call_operand.hbm [shape: f32[1,128], index: 2, kind: input, shape index: {}]   ;;  %s1317_s3 = inlined_call_operand.vmem [shape: bf16[128,128], index: 3, kind: input, shape index: {}]   ;;  %s1318_s4 = inlined_call_operand.vmem [shape: bf16[128,32], index: 4, kind: input, shape index: {}]   ;;  %s1319_s5 = inlined_call_operand.hbm [shape: f32[1,32], index: 5, kind: input, shape index: {}]   ;;  %s1320_s6 = inlined_call_operand.vmem [shape: bf16[32,32], index: 6, kind: input, shape index: {}]   ;;  %s1321_s7 = inlined_call_operand.hbm [shape: f32[1,32], index: 7, kind: input, shape index: {}]   ;;  %s1322_s8 = inlined_call_operand.hbm [shape: bf16[32,128], index: 8, kind: input, shape index: {}]   ;;  %s1323_s9 = inlined_call_operand.hbm [shape: f32[1,128], index: 9, kind: input, shape index: {}]   ;;  %s1324_s10 = inlined_call_operand.hbm [shape: f32[8,128], index: 10, kind: output, shape index: {}]  }
   0x1   :  { %16 = vsyncpa [#allocation6], 0 }
   0x2   :  { %17 = vsyncpa [#allocation9], 0 }
   0x3   :  { %18 = vsyncpa [#allocation12], 0  ;;  %s40_s15 = sshll.u32 %s1316_s2, 4  ;;  %s41_s15 = int_to_ptr.hbm [resolvable:$true] %s40_s15 }
   0x4   :  { %19 = vsyncpa [#allocation4], 0  ;;  %s1069_s16 = smov [#allocation5]   ;;  %s68_s20 = sshll.u32 %s1321_s7, 4  ;;  %s69_s20 = int_to_ptr.hbm [resolvable:$true] %s68_s20 }
   0x5   :  { %s42_s17 = sshll.u32 %s1069_s16, 4  ;;  %s1070_s21 = smov [#allocation8]   ;;  %s43_s17 = int_to_ptr.vmem [resolvable:$true] %s42_s17 }
   0x6   :  { %45 = dma.hbm_to_vmem [thread:$0]  %s41_s15, 16, %s43_s17, [#allocation6]  }
   0x7   :  { %s70_s22 = sshll.u32 %s1070_s21, 4  ;;  %s24_s25 = sshll.u32 %s1314_s0, 4  ;;  %s71_s22 = int_to_ptr.vmem [resolvable:$true] %s70_s22  ;;  %s25_s25 = int_to_ptr.hbm [resolvable:$true] %s24_s25 }
   0x8   :  { %73 = dma.hbm_to_vmem [thread:$0]  %s69_s20, 16, %s71_s22, [#allocation9]  }
   0x9   :  { %s1071_s2 = smov [#allocation2]   ;;  %s55_s29 = sshll.u32 %s1319_s5, 4  ;;  %s56_s29 = int_to_ptr.hbm [resolvable:$true] %s55_s29 }
   0xa   :  { %s26_s26 = sshll.u32 %s1071_s2, 4  ;;  %s1072_s30 = smov 64   ;;  %s27_s26 = int_to_ptr.vmem [resolvable:$true] %s26_s26 }
   0xb   :  { %s1073_s7 = smov 4   ;;  %s1074_s11 = smov [#allocation7]  }
   0xc   :  { %32 = dma.hbm_to_vmem [thread:$0]  %s25_s25, 512, %s27_s26, [#allocation3], %s1072_s30, %s1072_s30, %s1073_s7  }
   0xd   :  { %s57_s12 = sshll.u32 %s1074_s11, 4  ;;  %s78_s14 = sshll.u32 %s1322_s8, 4  ;;  %s58_s12 = int_to_ptr.vmem [resolvable:$true] %s57_s12  ;;  %s79_s14 = int_to_ptr.hbm [resolvable:$true] %s78_s14 }
   0xe   :  { %60 = dma.hbm_to_vmem [thread:$0]  %s56_s29, 16, %s58_s12, [#allocation6]  }
   0xf   :  { %s92_s17 = sshll.u32 %s1323_s9, 4  ;;  %s1075_s5 = smov [#allocation10]   ;;  %s93_s17 = int_to_ptr.hbm [resolvable:$true] %s92_s17 }
  0x10   :  { %s80_s18 = sshll.u32 %s1075_s5, 4  ;;  %s1076_s19 = smov [#allocation11]   ;;  %s81_s18 = int_to_ptr.vmem [resolvable:$true] %s80_s18 }
  0x11   :  { %86 = dma.hbm_to_vmem [thread:$0]  %s79_s14, 256, %s81_s18, [#allocation9], %s1072_s30, %s1072_s30, %s1073_s7  }
  0x12   :  { %s94_s20 = sshll.u32 %s1076_s19, 4  ;;  %s95_s20 = int_to_ptr.vmem [resolvable:$true] %s94_s20 }
  0x13   :  { %97 = dma.hbm_to_vmem [thread:$0]  %s93_s17, 16, %s95_s20, [#allocation12]  }
  0x14   :  { %1059 = dma.done.wait [#allocation3], 512  }
  0x15   :  { %1060 = vsyncadd [#allocation3], 4294966784 }
  0x16   :  { %1061 = dma.done.wait [#allocation6], 32  }
  0x17   :  { %1062 = vsyncadd [#allocation6], 4294967264 }
  0x18   :  { %1063 = dma.done.wait [#allocation9], 272  }
  0x19   :  { %1064 = vsyncadd [#allocation9], 4294967024 }
  0x1a   :  { %1065 = dma.done.wait [#allocation12], 16  }
  0x1b   :  { %1066 = vsyncadd [#allocation12], 4294967280  ;;  %v1161_v0 = vld [vmem:[%s1317_s3 + $0x38] sm:$0xff]  ;;  %v820_v1 = vld [vmem:[%s1315_s1] sm:$0xff]  ;;  %vm163_vm0 = vcmask 130048   ;;  %v1077_v10 = vmov 0   ;;  %v205_v11 = vlaneseq }
  0x1c   :  { %275 = vmatpush.bf16.msra.mxu1 %v1161_v0  ;;  %v1170_v2 = vld [vmem:[%s1317_s3 + $0x30] sm:$0xff]  ;;  %v816_v3 = vld [vmem:[#allocation2] sm:$0xff]  ;;  %306 = vmatpush.bf16.msra.mxu2 %v1161_v0  ;;  %v826_v4 = vld [vmem:[%s1317_s3 + $0x28] sm:$0xff]  ;;  %v1078_v17 = vmov 0.5   ;;  %vm626_vm4 = vcmask 261120   ;;  %s697_s7 = sshll.u32 %s1324_s10, 4  ;;  %s698_s7 = int_to_ptr.hbm [resolvable:$true] %s697_s7 }
  0x1d   :  { %183 = vmatpush.bf16.msra.mxu0 %v820_v1  ;;  %337 = vmatpush.bf16.msra.mxu3 %v1161_v0  ;;  %v825_v5 = vld [vmem:[%s1317_s3 + $0x20] sm:$0xff]  ;;  %v824_v6 = vld [vmem:[%s1317_s3 + $0x18] sm:$0xff]  ;;  %v823_v7 = vld [vmem:[%s1317_s3 + $0x10] sm:$0xff]  ;;  %v1206_v12 = vand.u32 127, %v205_v11 }
  0x1e   :  { %v822_v8 = vld [vmem:[%s1317_s3 + $0x8] sm:$0xff]  ;;  %v821_v9 = vld [vmem:[%s1317_s3] sm:$0xff]  ;;  %s1079_s3 = smov 32  }
  0x1f   :  { %v1208_v13 = vld [vmem:[#allocation5] ss:$0 sm:$0xff]  ;;  %vm207_vm1 = vcmp.ge.s32.totalorder %v1206_v12, 64  ;;  %vm208_vm2 = vcmp.lt.s32.totalorder %v1206_v12, 96  ;;  %v817_v52 = vld [vmem:[#allocation2 + $0x8] sm:$0xff]  ;;  %vm681_vm5 = vcmp.ge.s32.totalorder %v1206_v12, 4 }
  0x20   :  { %276 = vmatpush.bf16.msra.mxu1 %v1170_v2  ;;  %730 = vmatmul.msk.bf16.vlgmr.msra.gmra.mxu0 %vm163_vm0, %v816_v3  ;;  %vm1213_vm3 = vmand %vm207_vm1, %vm208_vm2  ;;  %v834_v16 = vld [vmem:[%s1318_s4 + $0x28] sm:$0xff]  ;;  %vm682_vm6 = vcmp.lt.s32.totalorder %v1206_v12, 8 }
  0x21   :  { %461 = vmatpush.bf16.msrb.mxu0 %v1161_v0  ;;  %307 = vmatpush.bf16.msra.mxu2 %v1170_v2  ;;  %v1219_v18 = vsel %vm1213_vm3, 1.0, %v1078_v17  ;;  %vm683_vm7 = vmand %vm681_vm5, %vm682_vm6 }
  0x22   :  { %338 = vmatpush.bf16.msra.mxu3 %v1170_v2 }
  0x24   :  { %277 = vmatpush.bf16.msra.mxu1 %v826_v4 }
  0x25   :  { %462 = vmatpush.bf16.msrb.mxu0 %v1170_v2  ;;  %308 = vmatpush.bf16.msra.mxu2 %v826_v4 }
  0x26   :  { %339 = vmatpush.bf16.msra.mxu3 %v826_v4 }
  0x28   :  { %278 = vmatpush.bf16.msra.mxu1 %v825_v5 }
  0x29   :  { %463 = vmatpush.bf16.msrb.mxu0 %v826_v4  ;;  %309 = vmatpush.bf16.msra.mxu2 %v825_v5 }
  0x2a   :  { %340 = vmatpush.bf16.msra.mxu3 %v825_v5 }
  0x2c   :  { %279 = vmatpush.bf16.msra.mxu1 %v824_v6 }
  0x2d   :  { %464 = vmatpush.bf16.msrb.mxu0 %v825_v5  ;;  %310 = vmatpush.bf16.msra.mxu2 %v824_v6 }
  0x2e   :  { %341 = vmatpush.bf16.msra.mxu3 %v824_v6 }
  0x30   :  { %280 = vmatpush.bf16.msra.mxu1 %v823_v7  ;;  %731 = vmatmul.msk.bf16.gmra.mxu0 %vm163_vm0, %v817_v52 }
  0x31   :  { %465 = vmatpush.bf16.msrb.mxu0 %v824_v6  ;;  %311 = vmatpush.bf16.msra.mxu2 %v823_v7 }
  0x32   :  { %342 = vmatpush.bf16.msra.mxu3 %v823_v7 }
  0x34   :  { %281 = vmatpush.bf16.msra.mxu1 %v822_v8 }
  0x35   :  { %466 = vmatpush.bf16.msrb.mxu0 %v823_v7  ;;  %312 = vmatpush.bf16.msra.mxu2 %v822_v8 }
  0x36   :  { %343 = vmatpush.bf16.msra.mxu3 %v822_v8 }
  0x38   :  { %282 = vmatpush.bf16.msra.mxu1 %v821_v9 }
  0x39   :  { %467 = vmatpush.bf16.msrb.mxu0 %v822_v8  ;;  %313 = vmatpush.bf16.msra.mxu2 %v821_v9 }
  0x3a   :  { %344 = vmatpush.bf16.msra.mxu3 %v821_v9 }
  0x3b   :  { %283 = vmatmul.bf16.vlgmr.msra.gmra.mxu1 %v1077_v10 }
  0x3c   :  { %368 = vmatpush.bf16.msrb.mxu1 %v1161_v0 }
  0x3d   :  { %399 = vmatpush.bf16.msrb.mxu2 %v1161_v0  ;;  %468 = vmatpush.bf16.msrb.mxu0 %v821_v9 }
  0x3e   :  { %430 = vmatpush.bf16.msrb.mxu3 %v1161_v0 }
  0x40   :  { %369 = vmatpush.bf16.msrb.mxu1 %v1170_v2 }
  0x41   :  { %400 = vmatpush.bf16.msrb.mxu2 %v1170_v2 }
  0x42   :  { %431 = vmatpush.bf16.msrb.mxu3 %v1170_v2 }
  0x44   :  { %370 = vmatpush.bf16.msrb.mxu1 %v826_v4 }
  0x45   :  { %401 = vmatpush.bf16.msrb.mxu2 %v826_v4 }
  0x46   :  { %432 = vmatpush.bf16.msrb.mxu3 %v826_v4 }
  0x48   :  { %371 = vmatpush.bf16.msrb.mxu1 %v825_v5 }
  0x49   :  { %402 = vmatpush.bf16.msrb.mxu2 %v825_v5 }
  0x4a   :  { %433 = vmatpush.bf16.msrb.mxu3 %v825_v5 }
  0x4c   :  { %372 = vmatpush.bf16.msrb.mxu1 %v824_v6 }
  0x4d   :  { %403 = vmatpush.bf16.msrb.mxu2 %v824_v6 }
  0x4e   :  { %434 = vmatpush.bf16.msrb.mxu3 %v824_v6 }
  0x50   :  { %373 = vmatpush.bf16.msrb.mxu1 %v823_v7 }
  0x51   :  { %404 = vmatpush.bf16.msrb.mxu2 %v823_v7 }
  0x52   :  { %435 = vmatpush.bf16.msrb.mxu3 %v823_v7 }
  0x54   :  { %374 = vmatpush.bf16.msrb.mxu1 %v822_v8 }
  0x55   :  { %405 = vmatpush.bf16.msrb.mxu2 %v822_v8 }
  0x56   :  { %436 = vmatpush.bf16.msrb.mxu3 %v822_v8 }
  0x58   :  { %375 = vmatpush.bf16.msrb.mxu1 %v821_v9 }
  0x59   :  { %406 = vmatpush.bf16.msrb.mxu2 %v821_v9 }
  0x5a   :  { %437 = vmatpush.bf16.msrb.mxu3 %v821_v9 }
  0x5c   :  { %492 = vmatpush.bf16.msra.mxu1 %v1161_v0 }
  0x60   :  { %493 = vmatpush.bf16.msra.mxu1 %v1170_v2 }
  0x64   :  { %494 = vmatpush.bf16.msra.mxu1 %v826_v4 }
  0x68   :  { %495 = vmatpush.bf16.msra.mxu1 %v825_v5 }
  0x6c   :  { %496 = vmatpush.bf16.msra.mxu1 %v824_v6 }
  0x70   :  { %497 = vmatpush.bf16.msra.mxu1 %v823_v7 }
  0x74   :  { %498 = vmatpush.bf16.msra.mxu1 %v822_v8 }
  0x78   :  { %499 = vmatpush.bf16.msra.mxu1 %v821_v9 }
  0x9d   :  { %v185_v14 = vpop.f32.mrf.mxu0 }
  0x9e   :  { %v186_v15 = vadd.f32 %v1208_v13, %v185_v14 }
  0xa5   :  { %v187_v36 = vpop.f32.mrf.mxu0 }
  0xa6   :  { %v188_v37 = vadd.f32 %v1208_v13, %v187_v36 }
  0xad   :  { %v190_v56 = vpop.f32.mrf.mxu0 }
  0xae   :  { %v191_v57 = vadd.f32 %v1208_v13, %v190_v56 }
  0xb5   :  { %v192_v11 = vpop.f32.mrf.mxu0 }
  0xb6   :  { %v193_v14 = vadd.f32 %v1208_v13, %v192_v11 }
  0xb8   :  { %v284_v19 = vpop.f32.mrf.mxu1 }
  0xb9   :  { %v288_v20 = vadd.f32 %v284_v19, %v186_v15 }
  0xbb   :  { %v289_v21 = vmul.f32 %v288_v20, %v1219_v18 }
  0xbd   :  { %857 = vtanh.f32 %v289_v21 }
  0xc0   :  { %v286_v22 = vpop.f32.mrf.mxu1 }
  0xc3   :  { %v858_v23 = vpop.eup %857 }
  0xc4   :  { %v291_v24 = vadd.f32 1.0, %v858_v23 }
  0xc6   :  { %v292_v25 = vmul.f32 0.5, %v291_v24 }
  0xc8   :  { %v293_v26 = vsel %vm1213_vm3, %v858_v23, %v292_v25 }
  0xc9   :  { %294 = vrot.lane.b32.xlu0 %v293_v26, %s1072_s30  ;;  %v299_v29 = vmul.f32 0.0, %v293_v26 }
 0x13b   :  { %v295_v27 = vpop.permute.xlu0 %294 }
 0x13c   :  { %v296_v28 = vmul.f32 %v295_v27, %v293_v26 }
 0x13e   :  { %297 = vrot.lane.b32.xlu0 %v296_v28, %s1079_s3 }
 0x1b0   :  { %v298_v30 = vpop.permute.xlu0 %297 }
 0x1b1   :  { %v300_v31 = vadd.f32 %v299_v29, %v298_v30 }
 0x1b3   :  { %859 = vtanh.f32 %v300_v31 }
 0x1b9   :  { %v860_v32 = vpop.eup %859 }
 0x1ba   :  { %302 = vrot.lane.b32.xlu1 %v860_v32, %s1072_s30 }
 0x22c   :  { %v303_v33 = vpop.permute.xlu1 %302 }
 0x22d   :  { %v304_v34 = vmul.f32 %v303_v33, %v293_v26 }
 0x22f   :  { %v305_v35 = vpack.c.bf16 %v304_v34, %v304_v34 }
 0x231   :  { %314 = vmatmul.bf16.vlgmr.msra.gmra.mxu2 %v305_v35 }
 0x2b4   :  { %v315_v38 = vpop.f32.mrf.mxu2 }
 0x2b5   :  { %v319_v39 = vadd.f32 %v315_v38, %v188_v37 }
 0x2b7   :  { %v320_v40 = vmul.f32 %v319_v39, %v1219_v18 }
 0x2b9   :  { %861 = vtanh.f32 %v320_v40 }
 0x2bc   :  { %v317_v41 = vpop.f32.mrf.mxu2 }
 0x2bf   :  { %v862_v42 = vpop.eup %861 }
 0x2c0   :  { %v322_v43 = vadd.f32 1.0, %v862_v42 }
 0x2c2   :  { %v323_v44 = vmul.f32 0.5, %v322_v43 }
 0x2c4   :  { %v324_v45 = vsel %vm1213_vm3, %v862_v42, %v323_v44 }
 0x2c5   :  { %325 = vrot.lane.b32.xlu1 %v324_v45, %s1072_s30  ;;  %v330_v48 = vmul.f32 %v324_v45, %v300_v31  ;;  %v818_v31 = vld [vmem:[#allocation2 + $0x10] sm:$0xff] }
 0x2c6   :  { %732 = vmatmul.msk.bf16.gmra.mxu0 %vm163_vm0, %v818_v31 }
 0x337   :  { %v326_v46 = vpop.permute.xlu1 %325 }
 0x338   :  { %v327_v47 = vmul.f32 %v326_v46, %v324_v45 }
 0x33a   :  { %328 = vrot.lane.b32.xlu2 %v327_v47, %s1079_s3 }
 0x343   :  { %v195_v35 = vpop.f32.mrf.mxu0 }
 0x344   :  { %v196_v36 = vadd.f32 %v1208_v13, %v195_v35 }
 0x394   :  { %v329_v49 = vpop.permute.xlu2 %328 }
 0x395   :  { %v331_v50 = vadd.f32 %v330_v48, %v329_v49 }
 0x397   :  { %863 = vtanh.f32 %v331_v50 }
 0x39d   :  { %v864_v51 = vpop.eup %863 }
 0x39e   :  { %333 = vrot.lane.b32.xlu2 %v864_v51, %s1072_s30 }
 0x3f8   :  { %v334_v53 = vpop.permute.xlu2 %333 }
 0x3f9   :  { %v335_v54 = vmul.f32 %v334_v53, %v324_v45 }
 0x3fb   :  { %v336_v55 = vpack.c.bf16 %v335_v54, %v335_v54  ;;  %v197_v54 = vpop.f32.mrf.mxu0 }
 0x3fd   :  { %345 = vmatmul.bf16.vlgmr.msra.gmra.mxu3 %v336_v55  ;;  %v198_v55 = vadd.f32 %v1208_v13, %v197_v54  ;;  %v838_v54 = vld [vmem:[%s1320_s6 + $0x8] sm:$0xff] }
 0x3fe   :  { %636 = vmatpush.bf16.msra.mxu3 %v838_v54 }
 0x480   :  { %v346_v58 = vpop.f32.mrf.mxu3 }
 0x481   :  { %v350_v59 = vadd.f32 %v346_v58, %v191_v57 }
 0x483   :  { %v351_v60 = vmul.f32 %v350_v59, %v1219_v18 }
 0x485   :  { %865 = vtanh.f32 %v351_v60 }
 0x488   :  { %v348_v61 = vpop.f32.mrf.mxu3 }
 0x48b   :  { %v866_v62 = vpop.eup %865 }
 0x48c   :  { %v353_v63 = vadd.f32 1.0, %v866_v62 }
 0x48e   :  { %v354_v0 = vmul.f32 0.5, %v353_v63 }
 0x490   :  { %v355_v1 = vsel %vm1213_vm3, %v866_v62, %v354_v0 }
 0x491   :  { %356 = vrot.lane.b32.xlu0 %v355_v1, %s1072_s30  ;;  %v361_v4 = vmul.f32 %v355_v1, %v331_v50 }
 0x503   :  { %v357_v2 = vpop.permute.xlu0 %356 }
 0x504   :  { %v358_v3 = vmul.f32 %v357_v2, %v355_v1  ;;  %v819_v2 = vld [vmem:[#allocation2 + $0x18] sm:$0xff] }
 0x505   :  { %733 = vmatmul.msk.bf16.gmra.mxu0 %vm163_vm0, %v819_v2 }
 0x506   :  { %359 = vrot.lane.b32.xlu1 %v358_v3, %s1079_s3 }
 0x578   :  { %v360_v5 = vpop.permute.xlu1 %359 }
 0x579   :  { %v362_v6 = vadd.f32 %v361_v4, %v360_v5 }
 0x57b   :  { %867 = vtanh.f32 %v362_v6 }
 0x581   :  { %v868_v7 = vpop.eup %867 }
 0x582   :  { %364 = vrot.lane.b32.xlu2 %v868_v7, %s1072_s30 }
 0x5dc   :  { %v365_v8 = vpop.permute.xlu2 %364 }
 0x5dd   :  { %v366_v9 = vmul.f32 %v365_v8, %v355_v1 }
 0x5df   :  { %v367_v10 = vpack.c.bf16 %v366_v9, %v366_v9 }
 0x5e1   :  { %376 = vmatmul.bf16.vlgmr.msrb.gmra.mxu1 %v367_v10  ;;  %v200_v10 = vpop.f32.mrf.mxu0 }
 0x5e9   :  { %v202_v11 = vpop.f32.mrf.mxu0 }
 0x65e   :  { %v377_v15 = vpop.f32.mrf.mxu1 }
 0x65f   :  { %v381_v17 = vadd.f32 %v377_v15, %v193_v14  ;;  %v201_v14 = vadd.f32 %v1208_v13, %v200_v10 }
 0x661   :  { %v382_v19 = vmul.f32 %v381_v17, %v1219_v18 }
 0x663   :  { %869 = vtanh.f32 %v382_v19 }
 0x666   :  { %v379_v20 = vpop.f32.mrf.mxu1 }
 0x669   :  { %v870_v21 = vpop.eup %869 }
 0x66a   :  { %v384_v22 = vadd.f32 1.0, %v870_v21 }
 0x66c   :  { %v385_v23 = vmul.f32 0.5, %v384_v22 }
 0x66e   :  { %v386_v24 = vsel %vm1213_vm3, %v870_v21, %v385_v23 }
 0x66f   :  { %387 = vrot.lane.b32.xlu0 %v386_v24, %s1072_s30  ;;  %v392_v27 = vmul.f32 %v386_v24, %v362_v6 }
 0x6e1   :  { %v388_v25 = vpop.permute.xlu0 %387 }
 0x6e2   :  { %v389_v26 = vmul.f32 %v388_v25, %v386_v24 }
 0x6e4   :  { %390 = vrot.lane.b32.xlu1 %v389_v26, %s1079_s3 }
 0x756   :  { %v391_v28 = vpop.permute.xlu1 %390 }
 0x757   :  { %v393_v29 = vadd.f32 %v392_v27, %v391_v28 }
 0x759   :  { %871 = vtanh.f32 %v393_v29 }
 0x75f   :  { %v872_v30 = vpop.eup %871 }
 0x760   :  { %395 = vrot.lane.b32.xlu2 %v872_v30, %s1072_s30 }
 0x7ba   :  { %v396_v32 = vpop.permute.xlu2 %395 }
 0x7bb   :  { %v397_v33 = vmul.f32 %v396_v32, %v386_v24 }
 0x7bd   :  { %v398_v34 = vpack.c.bf16 %v397_v33, %v397_v33 }
 0x7bf   :  { %407 = vmatmul.bf16.vlgmr.msrb.gmra.mxu2 %v398_v34  ;;  %v203_v34 = vadd.f32 %v1208_v13, %v202_v11  ;;  %v836_v13 = vld [vmem:[%s1318_s4 + $0x38] sm:$0xff] }
 0x7c0   :  { %591 = vmatpush.bf16.msra.mxu2 %v836_v13 }
 0x842   :  { %v408_v37 = vpop.f32.mrf.mxu2 }
 0x843   :  { %v412_v38 = vadd.f32 %v408_v37, %v196_v36 }
 0x845   :  { %v413_v39 = vmul.f32 %v412_v38, %v1219_v18 }
 0x847   :  { %873 = vtanh.f32 %v413_v39 }
 0x84a   :  { %v410_v40 = vpop.f32.mrf.mxu2 }
 0x84d   :  { %v874_v41 = vpop.eup %873 }
 0x84e   :  { %v415_v42 = vadd.f32 1.0, %v874_v41 }
 0x850   :  { %v416_v43 = vmul.f32 0.5, %v415_v42 }
 0x852   :  { %v417_v44 = vsel %vm1213_vm3, %v874_v41, %v416_v43 }
 0x853   :  { %418 = vrot.lane.b32.xlu0 %v417_v44, %s1072_s30  ;;  %v423_v47 = vmul.f32 %v417_v44, %v393_v29 }
 0x8c5   :  { %v419_v45 = vpop.permute.xlu0 %418 }
 0x8c6   :  { %v420_v46 = vmul.f32 %v419_v45, %v417_v44  ;;  %v833_v45 = vld [vmem:[%s1318_s4 + $0x20] sm:$0xff] }
 0x8c8   :  { %421 = vrot.lane.b32.xlu1 %v420_v46, %s1079_s3  ;;  %v832_v46 = vld [vmem:[%s1318_s4 + $0x18] sm:$0xff] }
 0x93a   :  { %v422_v48 = vpop.permute.xlu1 %421 }
 0x93b   :  { %v424_v49 = vadd.f32 %v423_v47, %v422_v48  ;;  %v831_v47 = vld [vmem:[%s1318_s4 + $0x10] sm:$0xff] }
 0x93d   :  { %875 = vtanh.f32 %v424_v49 }
 0x943   :  { %v876_v50 = vpop.eup %875 }
 0x944   :  { %426 = vrot.lane.b32.xlu2 %v876_v50, %s1072_s30  ;;  %v830_v50 = vld [vmem:[%s1318_s4 + $0x8] sm:$0xff] }
 0x99e   :  { %v427_v51 = vpop.permute.xlu2 %426 }
 0x99f   :  { %v428_v52 = vmul.f32 %v427_v51, %v417_v44 }
 0x9a1   :  { %v429_v53 = vpack.c.bf16 %v428_v52, %v428_v52 }
 0x9a3   :  { %438 = vmatmul.bf16.vlgmr.msrb.gmra.mxu3 %v429_v53  ;;  %v829_v53 = vld [vmem:[%s1318_s4] sm:$0xff] }
 0xa26   :  { %v439_v56 = vpop.f32.mrf.mxu3 }
 0xa27   :  { %v443_v57 = vadd.f32 %v439_v56, %v198_v55  ;;  %v837_v55 = vld [vmem:[%s1320_s6] sm:$0xff] }
 0xa28   :  { %637 = vmatpush.bf16.msra.mxu3 %v837_v55 }
 0xa29   :  { %v444_v58 = vmul.f32 %v443_v57, %v1219_v18 }
 0xa2b   :  { %877 = vtanh.f32 %v444_v58 }
 0xa2e   :  { %v441_v59 = vpop.f32.mrf.mxu3 }
 0xa2f   :  { %v840_v59 = vld [vmem:[#allocation10 + $0x8] sm:$0xff] }
 0xa30   :  { %674 = vmatpush.bf16.msra.mxu0 %v840_v59 }
 0xa31   :  { %v878_v60 = vpop.eup %877 }
 0xa32   :  { %v446_v61 = vadd.f32 1.0, %v878_v60 }
 0xa34   :  { %v447_v62 = vmul.f32 0.5, %v446_v61  ;;  %v854_v61 = vld [vmem:[#allocation7] ss:$0 sm:$0xff] }
 0xa36   :  { %v448_v63 = vsel %vm1213_vm3, %v878_v60, %v447_v62  ;;  %v839_v60 = vld [vmem:[#allocation10] sm:$0xff] }
 0xa37   :  { %449 = vrot.lane.b32.xlu0 %v448_v63, %s1072_s30  ;;  %v454_v3 = vmul.f32 %v448_v63, %v424_v49  ;;  %675 = vmatpush.bf16.msra.mxu0 %v839_v60 }
 0xaa9   :  { %v450_v0 = vpop.permute.xlu0 %449 }
 0xaaa   :  { %v451_v1 = vmul.f32 %v450_v0, %v448_v63 }
 0xaac   :  { %452 = vrot.lane.b32.xlu1 %v451_v1, %s1079_s3 }
 0xb1e   :  { %v453_v4 = vpop.permute.xlu1 %452 }
 0xb1f   :  { %v455_v5 = vadd.f32 %v454_v3, %v453_v4  ;;  %v855_v3 = vld [vmem:[#allocation8] ss:$0 sm:$0xff] }
 0xb21   :  { %879 = vtanh.f32 %v455_v5 }
 0xb27   :  { %v880_v6 = vpop.eup %879 }
 0xb28   :  { %457 = vrot.lane.b32.xlu2 %v880_v6, %s1072_s30 }
 0xb82   :  { %v458_v7 = vpop.permute.xlu2 %457 }
 0xb83   :  { %v459_v8 = vmul.f32 %v458_v7, %v448_v63 }
 0xb85   :  { %v460_v9 = vpack.c.bf16 %v459_v8, %v459_v8 }
 0xb87   :  { %469 = vmatmul.bf16.vlgmr.msrb.gmra.mxu0 %v460_v9  ;;  %v856_v9 = vld [vmem:[#allocation11] ss:$0 sm:$0xff] }
 0xc04   :  { %v470_v15 = vpop.f32.mrf.mxu0 }
 0xc05   :  { %v474_v17 = vadd.f32 %v470_v15, %v201_v14 }
 0xc07   :  { %v475_v19 = vmul.f32 %v474_v17, %v1219_v18 }
 0xc09   :  { %881 = vtanh.f32 %v475_v19 }
 0xc0c   :  { %v472_v20 = vpop.f32.mrf.mxu0 }
 0xc0f   :  { %v882_v21 = vpop.eup %881 }
 0xc10   :  { %v477_v22 = vadd.f32 1.0, %v882_v21 }
 0xc12   :  { %v478_v23 = vmul.f32 0.5, %v477_v22 }
 0xc14   :  { %v479_v24 = vsel %vm1213_vm3, %v882_v21, %v478_v23 }
 0xc15   :  { %480 = vrot.lane.b32.xlu0 %v479_v24, %s1072_s30  ;;  %v485_v27 = vmul.f32 %v479_v24, %v455_v5 }
 0xc87   :  { %v481_v25 = vpop.permute.xlu0 %480 }
 0xc88   :  { %v482_v26 = vmul.f32 %v481_v25, %v479_v24 }
 0xc8a   :  { %483 = vrot.lane.b32.xlu1 %v482_v26, %s1079_s3 }
 0xcfc   :  { %v484_v28 = vpop.permute.xlu1 %483 }
 0xcfd   :  { %v486_v29 = vadd.f32 %v485_v27, %v484_v28 }
 0xcff   :  { %883 = vtanh.f32 %v486_v29 }
 0xd05   :  { %v884_v30 = vpop.eup %883 }
 0xd06   :  { %488 = vrot.lane.b32.xlu2 %v884_v30, %s1072_s30 }
 0xd60   :  { %v489_v31 = vpop.permute.xlu2 %488 }
 0xd61   :  { %v490_v32 = vmul.f32 %v489_v31, %v479_v24 }
 0xd63   :  { %v491_v33 = vpack.c.bf16 %v490_v32, %v490_v32 }
 0xd65   :  { %500 = vmatmul.bf16.vlgmr.msra.gmra.mxu1 %v491_v33 }
 0xde2   :  { %v501_v35 = vpop.f32.mrf.mxu1 }
 0xde3   :  { %v505_v36 = vadd.f32 %v501_v35, %v203_v34 }
 0xde5   :  { %v506_v37 = vmul.f32 %v505_v36, %v1219_v18  ;;  %v835_v18 = vld [vmem:[%s1318_s4 + $0x30] sm:$0xff]  ;;  %s1080_s4 = smov [#allocation13]  }
 0xde6   :  { %592 = vmatpush.bf16.msra.mxu2 %v835_v18  ;;  %s695_s6 = sshll.u32 %s1080_s4, 4  ;;  %s696_s6 = int_to_ptr.vmem [resolvable:$true] %s695_s6 }
 0xde7   :  { %885 = vtanh.f32 %v506_v37 }
 0xdea   :  { %v503_v38 = vpop.f32.mrf.mxu1  ;;  %593 = vmatpush.bf16.msra.mxu2 %v834_v16 }
 0xded   :  { %v886_v39 = vpop.eup %885 }
 0xdee   :  { %v508_v40 = vadd.f32 1.0, %v886_v39  ;;  %594 = vmatpush.bf16.msra.mxu2 %v833_v45 }
 0xdf0   :  { %v509_v41 = vmul.f32 0.5, %v508_v40 }
 0xdf2   :  { %v510_v42 = vsel %vm1213_vm3, %v886_v39, %v509_v41  ;;  %595 = vmatpush.bf16.msra.mxu2 %v832_v46 }
 0xdf3   :  { %511 = vrot.lane.b32.xlu0 %v510_v42, %s1072_s30  ;;  %v516_v48 = vmul.f32 %v510_v42, %v486_v29 }
 0xdf6   :  { %596 = vmatpush.bf16.msra.mxu2 %v831_v47 }
 0xdfa   :  { %597 = vmatpush.bf16.msra.mxu2 %v830_v50 }
 0xdfe   :  { %598 = vmatpush.bf16.msra.mxu2 %v829_v53 }
 0xe65   :  { %v512_v43 = vpop.permute.xlu0 %511 }
 0xe66   :  { %v513_v44 = vmul.f32 %v512_v43, %v510_v42 }
 0xe68   :  { %514 = vrot.lane.b32.xlu1 %v513_v44, %s1079_s3 }
 0xeda   :  { %v515_v49 = vpop.permute.xlu1 %514 }
 0xedb   :  { %v517_v51 = vadd.f32 %v516_v48, %v515_v49 }
 0xedd   :  { %887 = vtanh.f32 %v517_v51 }
 0xee3   :  { %v888_v52 = vpop.eup %887 }
 0xee4   :  { %519 = vrot.lane.b32.xlu2 %v888_v52, %s1072_s30 }
 0xf3e   :  { %v520_v56 = vpop.permute.xlu2 %519 }
 0xf3f   :  { %v521_v57 = vmul.f32 %v520_v56, %v510_v42 }
 0xf41   :  { %v522_v58 = vpack.c.bf16 %v521_v57, %v521_v57 }
 0xf43   :  { %599 = vmatmul.bf16.vlgmr.msra.gmra.mxu2 %v522_v58 }
 0xfc6   :  { %v600_v62 = vpop.f32.mrf.mxu2 }
 0xfc7   :  { %v601_v63 = vadd.f32 %v854_v61, %v600_v62 }
 0xfc9   :  { %v604_v0 = vmax.f32 %v601_v63, 0.0 }
 0xfcb   :  { %v605_v1 = vpack.c.bf16 %v604_v0, %v604_v0 }
 0xfcd   :  { %806 = vmatmul.msk.bf16.vlgmr.msra.gmra.mxu3 %vm626_vm4, %v605_v1 }
 0xfce   :  { %v602_v2 = vpop.f32.mrf.mxu2 }
0x1050   :  { %v639_v4 = vpop.f32.mrf.mxu3 }
0x1051   :  { %v640_v5 = vadd.f32 %v855_v3, %v639_v4 }
0x1053   :  { %v643_v6 = vmax.f32 %v640_v5, 0.0 }
0x1055   :  { %v644_v7 = vpack.c.bf16 %v643_v6, %v643_v6 }
0x1057   :  { %815 = vmatmul.msk.bf16.vlgmr.msra.gmra.mxu0 %vm626_vm4, %v644_v7 }
0x1058   :  { %v641_v8 = vpop.f32.mrf.mxu3 }
0x10d4   :  { %v677_v10 = vpop.f32.mrf.mxu0 }
0x10d5   :  { %v678_v11 = vadd.f32 %v856_v9, %v677_v10 }
0x10d7   :  { %v684_v14 = vmul.f32 1.442695, %v678_v11 }
0x10d9   :  { %889 = vpow2.f32 %v684_v14 }
0x10dc   :  { %v679_v15 = vpop.f32.mrf.mxu0 }
0x10df   :  { %v890_v17 = vpop.eup %889 }
0x10e0   :  { %v686_v19 = vmax.f32 %v890_v17, -20.0 }
0x10e2   :  { %v687_v20 = vmin.f32 %v686_v19, 2.0 }
0x10e4   :  { %v688_v21 = vsel %vm683_vm7, %v687_v20, %v678_v11 }
0x10e5   :  { %689 = vst [vmem:[#allocation13] sm:$0xff] %v688_v21 }
0x10e6   :  { %700 = dma.vmem_to_hbm [thread:$0]  %s696_s6, 128, %s698_s7, [#allocation4]  }
0x10e7   :  { %1067 = dma.done.wait [#allocation4], 128  }
0x10e8   :  { %1068 = vsyncadd [#allocation4], 4294967168 }
0x10e9   :  { %705 = vsyncpa [#allocation3], 1 }
0x10ea   :  { %706 = vsyncpa [#allocation6], 1 }
0x10eb   :  { %707 = vsyncpa [#allocation9], 1 }
0x10ec   :  { %708 = vsyncpa [#allocation12], 1 }
0x10ed   :  { %709 = vsyncpa [#allocation4], 1 }

</bundles_post_ra>
